<compile_context>
chip_gen: v6e
topology: v6e:2x2x1
jax: 0.10.0
libtpu: 0.0.40
codegen_flags: <defaults>
</compile_context>

<pallas_src>
import numpy as np
import jax
import jax.numpy as jnp
from jax.experimental import pallas as pl
from jax.experimental.pallas import tpu as pltpu


# Rows of the padded table streamed per reduction step.
# Multiple of 16 (bf16 sublane packing).
DEFAULT_VOCAB_CHUNK = 512


def _round_up(x: int, m: int) -> int:
    return ((x + m - 1) // m) * m


# ----------------------------------------------------------------------------
# Kernel: one grid step = (token tile i, vocab chunk k).
#   ids_ref   : (T, 1)      int32  token ids for tile i
#   table_ref : (chunk, Dp) bf16   vocab chunk k of the padded table
#   out_ref   : (T, Dp)     f32    output tile (written at last k)
#   acc_ref   : (T, Dp)     f32    VMEM accumulator, resident across k
# The gather is a one-hot matmul on the MXU (default precision, single bf16
# pass): one-hot values are exactly 0/1, so each output row is the exact bf16
# table row accumulated in f32.  Out-of-range / negative ids silently produce
# all-zero rows (unlike nn.Embedding, which would error).
# ----------------------------------------------------------------------------
def _embed_onehot_kernel(ids_ref, table_ref, out_ref, acc_ref):
    k = pl.program_id(1)

    @pl.when(k == 0)
    def _():
        acc_ref[...] = jnp.zeros_like(acc_ref)

    ids = ids_ref[...]                                   # (T, 1) int32
    t = ids.shape[0]
    chunk = table_ref.shape[0]
    base = k * chunk

    col = jax.lax.broadcasted_iota(jnp.int32, (t, chunk), dimension=1) + base
    onehot = (col == ids).astype(table_ref.dtype)        # (T, chunk) bf16 0/1

    # Single-pass bf16 MXU matmul with f32 accumulation (default precision).
    acc_ref[...] += jnp.dot(onehot, table_ref[...],
                            preferred_element_type=jnp.float32)

    @pl.when(k == pl.num_programs(1) - 1)
    def _():
        out_ref[...] = acc_ref[...].astype(out_ref.dtype)


# ----------------------------------------------------------------------------
# One-time setup (analogue of storing nn.Embedding.weight): pad + cast the
# (V, D) f32 table to a lane/sublane-aligned (Vp, Dp) bf16 table.  Hoisted out
# of the per-call path so the table is not re-copied through HBM every lookup.
# ----------------------------------------------------------------------------
def prepare_embedding_table(table: jax.Array,
                            *,
                            table_dtype=jnp.bfloat16,
                            vocab_chunk: int = DEFAULT_VOCAB_CHUNK) -> jax.Array:
    V, D = table.shape
    Dp = _round_up(D, 128)                          # lane-dense columns
    chunk = min(vocab_chunk, _round_up(V, 16))      # bf16 sublane packing: 16
    Vp = _round_up(V, chunk)                        # whole number of chunks
    return (jnp.zeros((Vp, Dp), table_dtype)
            .at[:V, :D].set(table.astype(table_dtype)))


def _vmem_capacity_bytes() -> int:
    """Generation-aware VMEM capacity; conservative fallback = v7x per-TC."""
    try:
        info = pltpu.get_tpu_info()
        cap = getattr(info, "vmem_capacity_bytes", None)
        if cap:
            return int(cap)
    except Exception:
        pass
    return 64 * 1024 * 1024


# ----------------------------------------------------------------------------
# Pallas embedding lookup (== nn.Embedding(padding_idx=0) forward).
#   table_p: (Vp, Dp) bf16 table from prepare_embedding_table
#   ids:     (B, S) int32, values in [0, V)
# returns (B, S, embed_dim) float32
# ----------------------------------------------------------------------------
def embedding_lookup(table_p: jax.Array, ids: jax.Array,
                     *,
                     embed_dim: int,
                     tokens_per_tile: int = 256,
                     vocab_chunk: int = DEFAULT_VOCAB_CHUNK) -> jax.Array:
    B, S = ids.shape
    Vp, Dp = table_p.shape
    N = B * S
    T = tokens_per_tile
    assert T % 8 == 0

    chunk = min(vocab_chunk, Vp)
    assert Vp % chunk == 0, "table must be prepared with the same vocab_chunk"
    KC = Vp // chunk

    Np = _round_up(N, T)
    G = Np // T

    # Pad ids with 0 (the padding row -> zeros); padded rows are sliced off.
    flat_ids = jnp.zeros((Np,), jnp.int32).at[:N].set(
        ids.reshape(N).astype(jnp.int32))
    ids_col = flat_ids.reshape(Np, 1)               # (Np, 1) column layout

    # Explicit VMEM budget: double-buffered inputs/outputs + accumulator +
    # one-hot temporaries, with headroom, clamped to this chip's capacity.
    tbl_item = jnp.dtype(table_p.dtype).itemsize
    est = (2 * chunk * Dp * tbl_item        # table chunk (double-buffered)
           + 2 * T * 4                      # ids tile (double-buffered)
           + 2 * T * Dp * 4                 # output tile (double-buffered)
           + T * Dp * 4                     # f32 accumulator scratch
           + 2 * T * chunk * 4)             # iota / one-hot temporaries
    vmem_limit = int(min(_vmem_capacity_bytes(),
                         max(8 * 1024 * 1024, 2 * est)))

    grid_spec = pltpu.PrefetchScalarGridSpec(
        num_scalar_prefetch=0,
        grid=(G, KC),                               # reduction (vocab) axis last
        in_specs=[
            # One tile of token ids per outer step.
            pl.BlockSpec((T, 1), lambda i, k: (i, 0)),
            # One vocab chunk of the table per inner step (streamed from HBM).
            pl.BlockSpec((chunk, Dp), lambda i, k: (k, 0)),
        ],
        # Lane-dense (T, Dp) output tile, one distinct block per outer step.
        out_specs=pl.BlockSpec((T, Dp), lambda i, k: (i, 0)),
        scratch_shapes=[pltpu.VMEM((T, Dp), jnp.float32)],
    )

    out_flat = pl.pallas_call(
        _embed_onehot_kernel,
        grid_spec=grid_spec,
        out_shape=jax.ShapeDtypeStruct((Np, Dp), jnp.float32),
        compiler_params=pltpu.CompilerParams(
            dimension_semantics=("parallel", "arbitrary"),
            vmem_limit_bytes=vmem_limit,
        ),
    )(ids_col, table_p)

    return out_flat[:N, :embed_dim].reshape(B, S, embed_dim)


# ----------------------------------------------------------------------------
# Deterministic parameter construction mirroring TorchBase.load_glove():
#   glove = concat([pad(zeros), unk(rand), start(rand), end(rand), base_glove])
# ----------------------------------------------------------------------------
def build_glove_table(key, base_vocab: int, glove_dim: int) -> jax.Array:
    k_unk, k_start, k_end, k_base = jax.random.split(key, 4)
    pad = jnp.zeros((1, glove_dim), jnp.float32)
    unk = jax.random.uniform(k_unk, (1, glove_dim), jnp.float32)
    start = jax.random.uniform(k_start, (1, glove_dim), jnp.float32)
    end = jax.random.uniform(k_end, (1, glove_dim), jnp.float32)
    base = jax.random.normal(k_base, (base_vocab, glove_dim), jnp.float32)
    return jnp.concatenate([pad, unk, start, end, base], axis=0)


def _check(table_f32, table_p, ids, glove_dim, **lookup_kwargs):
    out = embedding_lookup(table_p, ids, embed_dim=glove_dim, **lookup_kwargs)
    out = jax.block_until_ready(out)
    # The kernel gathers bf16-stored weights exactly (single-pass MXU, one-hot
    # selection, f32 accumulation) -> compare bit-tight against the
    # bf16-rounded table, and loosely against the original f32 table.
    ref_bf16 = jnp.take(
        table_f32.astype(jnp.bfloat16).astype(jnp.float32), ids, axis=0)
    np.testing.assert_allclose(np.asarray(out), np.asarray(ref_bf16),
                               rtol=1e-6, atol=1e-6)
    ref_f32 = jnp.take(table_f32, ids, axis=0)
    np.testing.assert_allclose(np.asarray(out), np.asarray(ref_f32),
                               rtol=2e-2, atol=2e-2)
    return out


if __name__ == "__main__":
    # Small shapes consistent with the module (glove_dim scaled down from 300).
    B, S = 2, 8          # batch of token-id sequences
    glove_dim = 32       # scaled-down GloVe dimension
    base_vocab = 60      # scaled-down vocab; total rows = 64 (pad/unk/start/end + base)

    key = jax.random.PRNGKey(0)
    k_table, k_ids, k_ids2 = jax.random.split(key, 3)

    table = build_glove_table(k_table, base_vocab, glove_dim)   # (64, 32) f32
    V = table.shape[0]

    ids = jax.random.randint(k_ids, (B, S), 0, V, dtype=jnp.int32)
    # Ensure some padding ids are exercised (padding_idx=0 -> zero rows).
    ids = ids.at[:, -1].set(0)

    # One-time table preparation (hoisted out of the per-call path).
    table_p = prepare_embedding_table(table)                    # single chunk
    out = _check(table, table_p, ids, glove_dim)
    assert out.shape == (B, S, glove_dim)
    assert np.all(np.asarray(out[:, -1, :]) == 0.0)  # pad rows are zeros

    # Second check: multiple token tiles AND multiple vocab chunks (KC > 1)
    # to exercise the streamed-table accumulation path.
    table_p_chunked = prepare_embedding_table(table, vocab_chunk=16)
    ids_big = jax.random.randint(k_ids2, (4, 96), 0, V, dtype=jnp.int32)
    ids_big = ids_big.at[:, 0].set(0)
    _check(table, table_p_chunked, ids_big, glove_dim, vocab_chunk=16)

    print("KERNEL_OK")
</pallas_src>

<mosaic_0001>
module attributes {stable_mosaic.version = 11 : i64} {
  func.func @_embed_onehot_kernel(%arg0: i32, %arg1: i32, %arg2: memref<256x1xi32, #tpu.memory_space<vmem>>, %arg3: memref<64x128xbf16, #tpu.memory_space<vmem>>, %arg4: memref<256x128xf32, #tpu.memory_space<vmem>>, %arg5: memref<256x128xf32, #tpu.memory_space<vmem>>) attributes {dimension_semantics = [#tpu.dimension_semantics<parallel>, #tpu.dimension_semantics<arbitrary>], iteration_bounds = array<i64: 1, 1>, scalar_prefetch = 0 : i64, scratch_operands = 1 : i64, tpu.core_type = #tpu.core_type<tc>, window_params = [{transform_indices = @transform_0, window_bounds = array<i64: 256, 1>}, {transform_indices = @transform_1, window_bounds = array<i64: 64, 128>}, {transform_indices = @transform_2, window_bounds = array<i64: 256, 128>}]} {
    %c0_i32 = arith.constant 0 : i32
    %0 = arith.cmpi eq, %arg1, %c0_i32 : i32
    %1 = arith.extui %0 : i1 to i32
    %c0_i32_0 = arith.constant 0 : i32
    %2 = arith.cmpi ne, %1, %c0_i32_0 : i32
    scf.if %2 {
      %cst_10 = arith.constant 0.000000e+00 : f32
      %21 = vector.broadcast %cst_10 : f32 to vector<256x128xf32>
      %c0_11 = arith.constant 0 : index
      %c0_12 = arith.constant 0 : index
      %22 = vector.load %arg5[%c0_11, %c0_12] : memref<256x128xf32, #tpu.memory_space<vmem>>, vector<256x128xf32>
      tpu.vector_store %arg5[%c0_11, %c0_12], %21 {strides = array<i32>} : memref<256x128xf32, #tpu.memory_space<vmem>>, vector<256x128xf32>,
    } else {
    }
    %c0 = arith.constant 0 : index
    %c0_1 = arith.constant 0 : index
    %3 = vector.load %arg2[%c0, %c0_1] : memref<256x1xi32, #tpu.memory_space<vmem>>, vector<256x1xi32>
    %c64_i32 = arith.constant 64 : i32
    %4 = arith.muli %arg1, %c64_i32 : i32
    %5 = tpu.iota {dimensions = array<i32: 1>} : vector<256x64xi32>
    %6 = vector.broadcast %4 : i32 to vector<256x64xi32>
    %7 = arith.addi %5, %6 : vector<256x64xi32>
    %8 = vector.broadcast %3 : vector<256x1xi32> to vector<256x64xi32>
    %9 = arith.cmpi eq, %7, %8 : vector<256x64xi32>
    %10 = arith.extui %9 : vector<256x64xi1> to vector<256x64xi32>
    %11 = arith.sitofp %10 : vector<256x64xi32> to vector<256x64xf32>
    %12 = arith.truncf %11 : vector<256x64xf32> to vector<256x64xbf16>
    %c0_2 = arith.constant 0 : index
    %c0_3 = arith.constant 0 : index
    %13 = vector.load %arg5[%c0_2, %c0_3] : memref<256x128xf32, #tpu.memory_space<vmem>>, vector<256x128xf32>
    %c0_4 = arith.constant 0 : index
    %c0_5 = arith.constant 0 : index
    %14 = vector.load %arg3[%c0_4, %c0_5] : memref<64x128xbf16, #tpu.memory_space<vmem>>, vector<64x128xbf16>
    %cst = arith.constant dense<0.000000e+00> : vector<256x128xf32>
    %15 = tpu.matmul %12, %14, %cst {dimension_numbers = #tpu.dot_dimension_numbers<[1], [0], [0], [1], [0, 0, 1, 1], [], []>} : vector<256x64xbf16>, vector<64x128xbf16>, vector<256x128xf32> -> vector<256x128xf32>
    %16 = arith.addf %13, %15 : vector<256x128xf32>
    %c0_6 = arith.constant 0 : index
    %c0_7 = arith.constant 0 : index
    %17 = vector.load %arg5[%c0_6, %c0_7] : memref<256x128xf32, #tpu.memory_space<vmem>>, vector<256x128xf32>
    tpu.vector_store %arg5[%c0_6, %c0_7], %16 {strides = array<i32>} : memref<256x128xf32, #tpu.memory_space<vmem>>, vector<256x128xf32>,
    %c0_i32_8 = arith.constant 0 : i32
    %18 = arith.cmpi eq, %arg1, %c0_i32_8 : i32
    %19 = arith.extui %18 : i1 to i32
    %c0_i32_9 = arith.constant 0 : i32
    %20 = arith.cmpi ne, %19, %c0_i32_9 : i32
    scf.if %20 {
      %c0_10 = arith.constant 0 : index
      %c0_11 = arith.constant 0 : index
      %21 = vector.load %arg5[%c0_10, %c0_11] : memref<256x128xf32, #tpu.memory_space<vmem>>, vector<256x128xf32>
      %c0_12 = arith.constant 0 : index
      %c0_13 = arith.constant 0 : index
      %22 = vector.load %arg4[%c0_12, %c0_13] : memref<256x128xf32, #tpu.memory_space<vmem>>, vector<256x128xf32>
      tpu.vector_store %arg4[%c0_12, %c0_13], %21 {strides = array<i32>} : memref<256x128xf32, #tpu.memory_space<vmem>>, vector<256x128xf32>,
    } else {
    }
    return
  }
  func.func @transform_0(%arg0: i32, %arg1: i32) -> (i32, i32) {
    %c0_i32 = arith.constant 0 : i32
    %c0_i32_0 = arith.constant 0 : i32
    return %arg0, %c0_i32 : i32, i32
  }
  func.func @transform_1(%arg0: i32, %arg1: i32) -> (i32, i32) {
    %c0_i32 = arith.constant 0 : i32
    %c0_i32_0 = arith.constant 0 : i32
    return %arg1, %c0_i32 : i32, i32
  }
  func.func @transform_2(%arg0: i32, %arg1: i32) -> (i32, i32) {
    %c0_i32 = arith.constant 0 : i32
    %c0_i32_0 = arith.constant 0 : i32
    return %arg0, %c0_i32 : i32, i32
  }
}

</mosaic_0001>

<bundles_post_ra>
// kernel: tpu_custom_call.1
= control target key start
LH: loop header
LB: loop body
LE: loop exit
PB: predicated region body
PF: predicated region fallthrough
CT: control target
= control target key end

     0   :  { %v868_v2 = vmov 0   ;;  %s1081_s0 = inlined_call_operand.vmem [shape: s32[256,1], index: 0, kind: input, shape index: {}]   ;;  %s1082_s1 = inlined_call_operand.vmem [shape: bf16[64,128], index: 1, kind: input, shape index: {}]   ;;  %s1083_s2 = inlined_call_operand.hbm [shape: f32[256,128], index: 2, kind: output, shape index: {}]  }
   0x1   :  { %v65_v0 = vld [vmem:[%s1081_s0 + $0x80] sm:$0xff]  ;;  %841 = vset.pattern.permute.xlu1 %v868_v2  ;;  %840 = vset.pattern.permute.xlu0 %v868_v2  ;;  %v66_v3 = vld [vmem:[%s1081_s0 + $0x88] sm:$0xff]  ;;  %v52_v5 = vld [vmem:[%s1081_s0 + $0x18] sm:$0xff] }
   0x2   :  { %v49_v1 = vld [vmem:[%s1081_s0] sm:$0xff]  ;;  %135 = vperm.xlu1 %841, %v65_v0   ;;  %v50_v4 = vld [vmem:[%s1081_s0 + $0x8] sm:$0xff]  ;;  %v51_v6 = vld [vmem:[%s1081_s0 + $0x10] sm:$0xff] }
   0x3   :  { %87 = vperm.xlu0 %840, %v49_v1   ;;  %v68_v7 = vld [vmem:[%s1081_s0 + $0x98] sm:$0xff]  ;;  %v67_v8 = vld [vmem:[%s1081_s0 + $0x90] sm:$0xff] }
   0x4   :  { %v842_v9 = vld [vmem:[%s1082_s1 + $0x18] sm:$0xff]   ;;  %v843_v10 = vld [vmem:[%s1082_s1 + $0x10] sm:$0xff]  }
   0x5   :  { %787 = vmatprep.subr.bf16.mxu0 %v842_v9  ;;  %827 = vmatprep.subr.bf16.mxu1 %v842_v9 }
   0x6   :  { %138 = vperm.xlu1 %841, %v66_v3  }
   0x7   :  { %90 = vperm.xlu0 %840, %v50_v4  }
   0xa   :  { %96 = vperm.xlu1 %841, %v52_v5  }
   0xb   :  { %93 = vperm.xlu0 %840, %v51_v6  }
   0xe   :  { %144 = vperm.xlu1 %841, %v68_v7  }
   0xf   :  { %141 = vperm.xlu0 %840, %v67_v8  }
  0x10   :  { %7 = vsyncpa [#allocation4], 0  ;;  %v54_v11 = vld [vmem:[%s1081_s0 + $0x28] sm:$0xff]  ;;  %v53_v12 = vld [vmem:[%s1081_s0 + $0x20] sm:$0xff]  ;;  %788 = vmatpush3.bf16.msra.mxu0 %v842_v9  ;;  %831 = vmatpush3.bf16.msra.mxu1 %v842_v9  ;;  %v82_v37 = vlaneseq  ;;  %vm358_vm4 = vcmask 523264   ;;  %v869_v43 = vmov 0.0  }
  0x11   :  { %789 = vmatprep.subr.bf16.mxu0 %v843_v10  ;;  %828 = vmatprep.subr.bf16.mxu1 %v843_v10  ;;  %v844_v13 = vld [vmem:[%s1082_s1 + $0x8] sm:$0xff]   ;;  %v69_v15 = vld [vmem:[%s1081_s0 + $0xa0] sm:$0xff]  ;;  %v56_v17 = vld [vmem:[%s1081_s0 + $0x38] sm:$0xff] }
  0x12   :  { %102 = vperm.xlu1 %841, %v54_v11   ;;  %v70_v14 = vld [vmem:[%s1081_s0 + $0xa8] sm:$0xff]  ;;  %v845_v16 = vld [vmem:[%s1082_s1] sm:$0xff]   ;;  %v55_v18 = vld [vmem:[%s1081_s0 + $0x30] sm:$0xff]  ;;  %v996_v38 = vand.u32 127, %v82_v37 }
  0x13   :  { %99 = vperm.xlu0 %840, %v53_v12   ;;  %v72_v19 = vld [vmem:[%s1081_s0 + $0xb8] sm:$0xff]  ;;  %v71_v20 = vld [vmem:[%s1081_s0 + $0xb0] sm:$0xff]  ;;  %v58_v21 = vld [vmem:[%s1081_s0 + $0x48] sm:$0xff] }
  0x14   :  { %790 = vmatpush3.bf16.msra.mxu0 %v843_v10  ;;  %832 = vmatpush3.bf16.msra.mxu1 %v843_v10  ;;  %v57_v22 = vld [vmem:[%s1081_s0 + $0x40] sm:$0xff]  ;;  %v74_v23 = vld [vmem:[%s1081_s0 + $0xc8] sm:$0xff]  ;;  %v60_v25 = vld [vmem:[%s1081_s0 + $0x58] sm:$0xff] }
  0x15   :  { %791 = vmatprep.subr.bf16.mxu0 %v844_v13  ;;  %829 = vmatprep.subr.bf16.mxu1 %v844_v13  ;;  %v73_v24 = vld [vmem:[%s1081_s0 + $0xc0] sm:$0xff]  ;;  %v59_v26 = vld [vmem:[%s1081_s0 + $0x50] sm:$0xff]  ;;  %v76_v27 = vld [vmem:[%s1081_s0 + $0xd8] sm:$0xff] }
  0x16   :  { %150 = vperm.xlu1 %841, %v70_v14   ;;  %v75_v28 = vld [vmem:[%s1081_s0 + $0xd0] sm:$0xff]  ;;  %v62_v29 = vld [vmem:[%s1081_s0 + $0x68] sm:$0xff]  ;;  %v61_v30 = vld [vmem:[%s1081_s0 + $0x60] sm:$0xff] }
  0x17   :  { %147 = vperm.xlu0 %840, %v69_v15   ;;  %v78_v31 = vld [vmem:[%s1081_s0 + $0xe8] sm:$0xff]  ;;  %v77_v32 = vld [vmem:[%s1081_s0 + $0xe0] sm:$0xff]  ;;  %v64_v33 = vld [vmem:[%s1081_s0 + $0x78] sm:$0xff] }
  0x18   :  { %792 = vmatpush3.bf16.msra.mxu0 %v844_v13  ;;  %833 = vmatpush3.bf16.msra.mxu1 %v844_v13  ;;  %v63_v34 = vld [vmem:[%s1081_s0 + $0x70] sm:$0xff]  ;;  %v80_v35 = vld [vmem:[%s1081_s0 + $0xf8] sm:$0xff] }
  0x19   :  { %793 = vmatprep.subr.bf16.mxu0 %v845_v16  ;;  %830 = vmatprep.subr.bf16.mxu1 %v845_v16  ;;  %v79_v36 = vld [vmem:[%s1081_s0 + $0xf0] sm:$0xff]  ;;  %s870_s0 = smov [#allocation3]  }
  0x1a   :  { %108 = vperm.xlu1 %841, %v56_v17   ;;  %s704_s23 = sshll.u32 %s870_s0, 4  ;;  %s705_s23 = int_to_ptr.vmem [resolvable:$true] %s704_s23 }
  0x1b   :  { %105 = vperm.xlu0 %840, %v55_v18   ;;  %s846_s24 = scalar_lea.vmem %s705_s23, 4096  ;;  %p851_p1 = scmp.lt.s32.totalorder %s705_s23, %s705_s23 }
  0x1c   :  { %794 = vmatpush3.bf16.msra.mxu0 %v845_v16  ;;  %834 = vmatpush3.bf16.msra.mxu1 %v845_v16  ;;  %p847_p0 = scmp.ne.s32.totalorder %s705_s23, %s846_s24  ;;  %p852_p2 = scmp.lt.s32.totalorder %s846_s24, %s846_s24 }
  0x1e   :  { %156 = vperm.xlu1 %841, %v72_v19   ;;  %p853_p3 = por %p852_p2, %p851_p1 }
  0x1f   :  { %153 = vperm.xlu0 %840, %v71_v20  }
  0x20   :  { %p854_p4 = pnand %p853_p3, %p847_p0 }
  0x22   :  { %114 = vperm.xlu1 %841, %v58_v21  }
  0x23   :  { %111 = vperm.xlu0 %840, %v57_v22  }
  0x26   :  { %162 = vperm.xlu1 %841, %v74_v23  }
  0x27   :  { %159 = vperm.xlu0 %840, %v73_v24  }
  0x2a   :  { %120 = vperm.xlu1 %841, %v60_v25  }
  0x2b   :  { %117 = vperm.xlu0 %840, %v59_v26  }
  0x2e   :  { %168 = vperm.xlu1 %841, %v76_v27  }
  0x2f   :  { %165 = vperm.xlu0 %840, %v75_v28  }
  0x32   :  { %126 = vperm.xlu1 %841, %v62_v29  }
  0x33   :  { %123 = vperm.xlu0 %840, %v61_v30  }
  0x36   :  { %174 = vperm.xlu1 %841, %v78_v31  }
  0x37   :  { %171 = vperm.xlu0 %840, %v77_v32  }
  0x3a   :  { %132 = vperm.xlu1 %841, %v64_v33  }
  0x3b   :  { %129 = vperm.xlu0 %840, %v63_v34  }
  0x3e   :  { %180 = vperm.xlu1 %841, %v80_v35  }
  0x3f   :  { %177 = vperm.xlu0 %840, %v79_v36  }
  0x7d   :  { %v136_v39 = vpop.permute.xlu1 %135 }
  0x7e   :  { %v88_v40 = vpop.permute.xlu0 %87  ;;  %vm198_vm0 = vcmp.eq.s32.totalorder %v996_v38, %v136_v39 }
  0x7f   :  { %vm182_vm1 = vcmp.eq.s32.totalorder %v996_v38, %v88_v40  ;;  %v731_v44 = vsel %vm198_vm0, 1.0, %v869_v43 }
  0x80   :  { %v715_v45 = vsel %vm182_vm1, 1.0, %v869_v43 }
  0x81   :  { %v139_v41 = vpop.permute.xlu1 %138 }
  0x82   :  { %v91_v42 = vpop.permute.xlu0 %90  ;;  %vm199_vm2 = vcmp.eq.s32.totalorder %v996_v38, %v139_v41 }
  0x83   :  { %vm183_vm3 = vcmp.eq.s32.totalorder %v996_v38, %v91_v42  ;;  %v732_v46 = vsel %vm199_vm2, 1.0, %v869_v43 }
  0x84   :  { %v716_v47 = vsel %vm183_vm3, 1.0, %v869_v43  ;;  %v286_v49 = vpack.c.bf16 %v732_v46, %v731_v44 }
  0x85   :  { %v278_v48 = vpack.c.bf16 %v716_v47, %v715_v45  ;;  %v97_v50 = vpop.permute.xlu1 %96 }
  0x86   :  { %v94_v51 = vpop.permute.xlu0 %93  ;;  %vm185_vm5 = vcmp.eq.s32.totalorder %v996_v38, %v97_v50  ;;  %811 = vmatprep.mubr.msk.bf16.mxu1 %vm358_vm4, %v286_v49 }
  0x87   :  { %vm184_vm6 = vcmp.eq.s32.totalorder %v996_v38, %v94_v51  ;;  %795 = vmatprep.mubr.msk.bf16.mxu0 %vm358_vm4, %v278_v48  ;;  %v718_v52 = vsel %vm185_vm5, 1.0, %v869_v43 }
  0x88   :  { %v717_v53 = vsel %vm184_vm6, 1.0, %v869_v43 }
  0x89   :  { %v279_v54 = vpack.c.bf16 %v718_v52, %v717_v53  ;;  %v145_v55 = vpop.permute.xlu1 %144 }
  0x8a   :  { %v142_v56 = vpop.permute.xlu0 %141  ;;  %vm201_vm7 = vcmp.eq.s32.totalorder %v996_v38, %v145_v55 }
  0x8b   :  { %vm200_vm8 = vcmp.eq.s32.totalorder %v996_v38, %v142_v56  ;;  %796 = vmatmul.mubr.msk.bf16.vlgmr.msra.gmra.mxu0 %vm358_vm4, %v279_v54  ;;  %v734_v57 = vsel %vm201_vm7, 1.0, %v869_v43 }
  0x8c   :  { %v733_v58 = vsel %vm200_vm8, 1.0, %v869_v43 }
  0x8d   :  { %v287_v59 = vpack.c.bf16 %v734_v57, %v733_v58  ;;  %v103_v60 = vpop.permute.xlu1 %102 }
  0x8e   :  { %v100_v61 = vpop.permute.xlu0 %99  ;;  %vm187_vm9 = vcmp.eq.s32.totalorder %v996_v38, %v103_v60 }
  0x8f   :  { %vm186_vm10 = vcmp.eq.s32.totalorder %v996_v38, %v100_v61  ;;  %812 = vmatmul.mubr.msk.bf16.vlgmr.msra.gmra.mxu1 %vm358_vm4, %v287_v59  ;;  %v720_v62 = vsel %vm187_vm9, 1.0, %v869_v43 }
  0x90   :  { %v719_v63 = vsel %vm186_vm10, 1.0, %v869_v43 }
  0x91   :  { %v280_v0 = vpack.c.bf16 %v720_v62, %v719_v63  ;;  %v151_v1 = vpop.permute.xlu1 %150 }
  0x92   :  { %v148_v2 = vpop.permute.xlu0 %147  ;;  %vm203_vm11 = vcmp.eq.s32.totalorder %v996_v38, %v151_v1 }
  0x93   :  { %vm202_vm12 = vcmp.eq.s32.totalorder %v996_v38, %v148_v2  ;;  %799 = vmatprep.mubr.msk.bf16.mxu0 %vm358_vm4, %v280_v0  ;;  %v736_v3 = vsel %vm203_vm11, 1.0, %v869_v43 }
  0x94   :  { %v735_v4 = vsel %vm202_vm12, 1.0, %v869_v43 }
  0x95   :  { %v288_v5 = vpack.c.bf16 %v736_v3, %v735_v4  ;;  %v109_v6 = vpop.permute.xlu1 %108 }
  0x96   :  { %v106_v7 = vpop.permute.xlu0 %105  ;;  %vm189_vm13 = vcmp.eq.s32.totalorder %v996_v38, %v109_v6 }
  0x97   :  { %vm188_vm14 = vcmp.eq.s32.totalorder %v996_v38, %v106_v7  ;;  %815 = vmatprep.mubr.msk.bf16.mxu1 %vm358_vm4, %v288_v5  ;;  %v722_v8 = vsel %vm189_vm13, 1.0, %v869_v43 }
  0x98   :  { %v721_v9 = vsel %vm188_vm14, 1.0, %v869_v43 }
  0x99   :  { %v281_v10 = vpack.c.bf16 %v722_v8, %v721_v9  ;;  %v157_v11 = vpop.permute.xlu1 %156 }
  0x9a   :  { %v154_v12 = vpop.permute.xlu0 %153  ;;  %vm205_vm15 = vcmp.eq.s32.totalorder %v996_v38, %v157_v11 }
  0x9b   :  { %vm204_vm0 = vcmp.eq.s32.totalorder %v996_v38, %v154_v12  ;;  %800 = vmatmul.mubr.msk.bf16.gmra.mxu0 %vm358_vm4, %v281_v10  ;;  %v738_v13 = vsel %vm205_vm15, 1.0, %v869_v43 }
  0x9c   :  { %v737_v14 = vsel %vm204_vm0, 1.0, %v869_v43 }
  0x9d   :  { %v289_v15 = vpack.c.bf16 %v738_v13, %v737_v14  ;;  %v115_v16 = vpop.permute.xlu1 %114 }
  0x9e   :  { %v112_v17 = vpop.permute.xlu0 %111  ;;  %vm191_vm1 = vcmp.eq.s32.totalorder %v996_v38, %v115_v16 }
  0x9f   :  { %vm190_vm2 = vcmp.eq.s32.totalorder %v996_v38, %v112_v17  ;;  %816 = vmatmul.mubr.msk.bf16.gmra.mxu1 %vm358_vm4, %v289_v15  ;;  %v724_v18 = vsel %vm191_vm1, 1.0, %v869_v43 }
  0xa0   :  { %v723_v19 = vsel %vm190_vm2, 1.0, %v869_v43 }
  0xa1   :  { %v282_v20 = vpack.c.bf16 %v724_v18, %v723_v19  ;;  %v163_v21 = vpop.permute.xlu1 %162 }
  0xa2   :  { %v160_v22 = vpop.permute.xlu0 %159  ;;  %vm207_vm3 = vcmp.eq.s32.totalorder %v996_v38, %v163_v21 }
  0xa3   :  { %vm206_vm5 = vcmp.eq.s32.totalorder %v996_v38, %v160_v22  ;;  %803 = vmatprep.mubr.msk.bf16.mxu0 %vm358_vm4, %v282_v20  ;;  %v740_v23 = vsel %vm207_vm3, 1.0, %v869_v43 }
  0xa4   :  { %v739_v24 = vsel %vm206_vm5, 1.0, %v869_v43 }
  0xa5   :  { %v290_v25 = vpack.c.bf16 %v740_v23, %v739_v24  ;;  %v121_v26 = vpop.permute.xlu1 %120 }
  0xa6   :  { %v118_v27 = vpop.permute.xlu0 %117  ;;  %vm193_vm6 = vcmp.eq.s32.totalorder %v996_v38, %v121_v26 }
  0xa7   :  { %vm192_vm7 = vcmp.eq.s32.totalorder %v996_v38, %v118_v27  ;;  %819 = vmatprep.mubr.msk.bf16.mxu1 %vm358_vm4, %v290_v25  ;;  %v726_v28 = vsel %vm193_vm6, 1.0, %v869_v43 }
  0xa8   :  { %v725_v29 = vsel %vm192_vm7, 1.0, %v869_v43 }
  0xa9   :  { %v283_v30 = vpack.c.bf16 %v726_v28, %v725_v29  ;;  %v169_v31 = vpop.permute.xlu1 %168 }
  0xaa   :  { %v166_v32 = vpop.permute.xlu0 %165  ;;  %vm209_vm8 = vcmp.eq.s32.totalorder %v996_v38, %v169_v31 }
  0xab   :  { %vm208_vm9 = vcmp.eq.s32.totalorder %v996_v38, %v166_v32  ;;  %804 = vmatmul.mubr.msk.bf16.gmra.mxu0 %vm358_vm4, %v283_v30  ;;  %v742_v33 = vsel %vm209_vm8, 1.0, %v869_v43 }
  0xac   :  { %v741_v34 = vsel %vm208_vm9, 1.0, %v869_v43 }
  0xad   :  { %v291_v35 = vpack.c.bf16 %v742_v33, %v741_v34  ;;  %v127_v36 = vpop.permute.xlu1 %126 }
  0xae   :  { %v124_v37 = vpop.permute.xlu0 %123  ;;  %vm195_vm10 = vcmp.eq.s32.totalorder %v996_v38, %v127_v36 }
  0xaf   :  { %vm194_vm11 = vcmp.eq.s32.totalorder %v996_v38, %v124_v37  ;;  %820 = vmatmul.mubr.msk.bf16.gmra.mxu1 %vm358_vm4, %v291_v35  ;;  %v728_v39 = vsel %vm195_vm10, 1.0, %v869_v43 }
  0xb0   :  { %v727_v40 = vsel %vm194_vm11, 1.0, %v869_v43 }
  0xb1   :  { %v284_v41 = vpack.c.bf16 %v728_v39, %v727_v40  ;;  %v175_v42 = vpop.permute.xlu1 %174 }
  0xb2   :  { %v172_v44 = vpop.permute.xlu0 %171  ;;  %vm211_vm12 = vcmp.eq.s32.totalorder %v996_v38, %v175_v42 }
  0xb3   :  { %vm210_vm13 = vcmp.eq.s32.totalorder %v996_v38, %v172_v44  ;;  %807 = vmatprep.mubr.msk.bf16.mxu0 %vm358_vm4, %v284_v41  ;;  %v744_v45 = vsel %vm211_vm12, 1.0, %v869_v43 }
  0xb4   :  { %v743_v46 = vsel %vm210_vm13, 1.0, %v869_v43 }
  0xb5   :  { %v292_v47 = vpack.c.bf16 %v744_v45, %v743_v46  ;;  %v133_v48 = vpop.permute.xlu1 %132 }
  0xb6   :  { %v130_v49 = vpop.permute.xlu0 %129  ;;  %vm197_vm14 = vcmp.eq.s32.totalorder %v996_v38, %v133_v48 }
  0xb7   :  { %vm196_vm15 = vcmp.eq.s32.totalorder %v996_v38, %v130_v49  ;;  %823 = vmatprep.mubr.msk.bf16.mxu1 %vm358_vm4, %v292_v47  ;;  %v730_v50 = vsel %vm197_vm14, 1.0, %v869_v43 }
  0xb8   :  { %v729_v51 = vsel %vm196_vm15, 1.0, %v869_v43 }
  0xb9   :  { %v285_v52 = vpack.c.bf16 %v730_v50, %v729_v51  ;;  %v181_v53 = vpop.permute.xlu1 %180 }
  0xba   :  { %v178_v54 = vpop.permute.xlu0 %177  ;;  %vm213_vm0 = vcmp.eq.s32.totalorder %v996_v38, %v181_v53 }
  0xbb   :  { %vm212_vm1 = vcmp.eq.s32.totalorder %v996_v38, %v178_v54  ;;  %808 = vmatmul.mubr.msk.bf16.gmra.mxu0 %vm358_vm4, %v285_v52  ;;  %v746_v55 = vsel %vm213_vm0, 1.0, %v869_v43 }
  0xbc   :  { %v745_v56 = vsel %vm212_vm1, 1.0, %v869_v43 }
  0xbd   :  { %v293_v57 = vpack.c.bf16 %v746_v55, %v745_v56 }
  0xbf   :  { %824 = vmatmul.mubr.msk.bf16.gmra.mxu1 %vm358_vm4, %v293_v57 }
 0x14b   :  { %v797_v58 = vpop.f32.mrf.mxu0 }
 0x14c   :  { %669 = vst [vmem:[#allocation3 + $0x10] sm:$0xff] %v797_v58 }
 0x14d   :  { %v441_v59 = vpop.f32.mrf.mxu0 }
 0x14e   :  { %667 = vst [vmem:[#allocation3] sm:$0xff] %v441_v59 }
 0x14f   :  { %v798_v60 = vpop.f32.mrf.mxu0  ;;  %v813_v61 = vpop.f32.mrf.mxu1 }
 0x150   :  { %670 = vst [vmem:[#allocation3 + $0x18] sm:$0xff] %v798_v60  ;;  %685 = vst [vmem:[#allocation3 + $0x90] sm:$0xff] %v813_v61 }
 0x151   :  { %v444_v62 = vpop.f32.mrf.mxu0  ;;  %v505_v63 = vpop.f32.mrf.mxu1 }
 0x152   :  { %668 = vst [vmem:[#allocation3 + $0x8] sm:$0xff] %v444_v62  ;;  %683 = vst [vmem:[#allocation3 + $0x80] sm:$0xff] %v505_v63 }
 0x153   :  { %v814_v38 = vpop.f32.mrf.mxu1 }
 0x154   :  { %686 = vst [vmem:[#allocation3 + $0x98] sm:$0xff] %v814_v38 }
 0x155   :  { %v508_v0 = vpop.f32.mrf.mxu1 }
 0x156   :  { %684 = vst [vmem:[#allocation3 + $0x88] sm:$0xff] %v508_v0 }
 0x15b   :  { %v801_v43 = vpop.f32.mrf.mxu0 }
 0x15c   :  { %673 = vst [vmem:[#allocation3 + $0x30] sm:$0xff] %v801_v43 }
 0x15d   :  { %v457_v1 = vpop.f32.mrf.mxu0 }
 0x15e   :  { %671 = vst [vmem:[#allocation3 + $0x20] sm:$0xff] %v457_v1 }
 0x15f   :  { %v802_v2 = vpop.f32.mrf.mxu0  ;;  %v817_v3 = vpop.f32.mrf.mxu1 }
 0x160   :  { %674 = vst [vmem:[#allocation3 + $0x38] sm:$0xff] %v802_v2  ;;  %689 = vst [vmem:[#allocation3 + $0xb0] sm:$0xff] %v817_v3 }
 0x161   :  { %v460_v4 = vpop.f32.mrf.mxu0  ;;  %v521_v5 = vpop.f32.mrf.mxu1 }
 0x162   :  { %672 = vst [vmem:[#allocation3 + $0x28] sm:$0xff] %v460_v4  ;;  %687 = vst [vmem:[#allocation3 + $0xa0] sm:$0xff] %v521_v5 }
 0x163   :  { %v818_v6 = vpop.f32.mrf.mxu1 }
 0x164   :  { %690 = vst [vmem:[#allocation3 + $0xb8] sm:$0xff] %v818_v6 }
 0x165   :  { %v524_v7 = vpop.f32.mrf.mxu1 }
 0x166   :  { %688 = vst [vmem:[#allocation3 + $0xa8] sm:$0xff] %v524_v7 }
 0x16b   :  { %v805_v8 = vpop.f32.mrf.mxu0 }
 0x16c   :  { %677 = vst [vmem:[#allocation3 + $0x50] sm:$0xff] %v805_v8 }
 0x16d   :  { %v473_v9 = vpop.f32.mrf.mxu0 }
 0x16e   :  { %675 = vst [vmem:[#allocation3 + $0x40] sm:$0xff] %v473_v9 }
 0x16f   :  { %v806_v10 = vpop.f32.mrf.mxu0  ;;  %v821_v11 = vpop.f32.mrf.mxu1 }
 0x170   :  { %678 = vst [vmem:[#allocation3 + $0x58] sm:$0xff] %v806_v10  ;;  %693 = vst [vmem:[#allocation3 + $0xd0] sm:$0xff] %v821_v11 }
 0x171   :  { %v476_v12 = vpop.f32.mrf.mxu0  ;;  %v537_v13 = vpop.f32.mrf.mxu1 }
 0x172   :  { %676 = vst [vmem:[#allocation3 + $0x48] sm:$0xff] %v476_v12  ;;  %691 = vst [vmem:[#allocation3 + $0xc0] sm:$0xff] %v537_v13 }
 0x173   :  { %v822_v14 = vpop.f32.mrf.mxu1 }
 0x174   :  { %694 = vst [vmem:[#allocation3 + $0xd8] sm:$0xff] %v822_v14 }
 0x175   :  { %v540_v15 = vpop.f32.mrf.mxu1 }
 0x176   :  { %692 = vst [vmem:[#allocation3 + $0xc8] sm:$0xff] %v540_v15 }
 0x17b   :  { %v809_v16 = vpop.f32.mrf.mxu0 }
 0x17c   :  { %681 = vst [vmem:[#allocation3 + $0x70] sm:$0xff] %v809_v16 }
 0x17d   :  { %v489_v17 = vpop.f32.mrf.mxu0 }
 0x17e   :  { %679 = vst [vmem:[#allocation3 + $0x60] sm:$0xff] %v489_v17 }
 0x17f   :  { %v810_v18 = vpop.f32.mrf.mxu0  ;;  %v825_v19 = vpop.f32.mrf.mxu1 }
 0x180   :  { %682 = vst [vmem:[#allocation3 + $0x78] sm:$0xff] %v810_v18  ;;  %697 = vst [vmem:[#allocation3 + $0xf0] sm:$0xff] %v825_v19 }
 0x181   :  { %v492_v20 = vpop.f32.mrf.mxu0  ;;  %v553_v21 = vpop.f32.mrf.mxu1 }
 0x182   :  { %680 = vst [vmem:[#allocation3 + $0x68] sm:$0xff] %v492_v20  ;;  %695 = vst [vmem:[#allocation3 + $0xe0] sm:$0xff] %v553_v21 }
 0x183   :  { %v826_v22 = vpop.f32.mrf.mxu1 }
 0x184   :  { %698 = vst [vmem:[#allocation3 + $0xf8] sm:$0xff] %v826_v22 }
 0x185   :  { %v556_v23 = vpop.f32.mrf.mxu1 }
 0x186   :  { %696 = vst [vmem:[#allocation3 + $0xe8] sm:$0xff] %v556_v23 }
 0x187   :  { %857 = shalt.err (!%p854_p4)
}
 0x188   :  { %s871_s25 = smov 128   ;;  %s872_s26 = smov 8  }
 0x189   :  { %710 = dma.vmem_to_hbm [thread:$0]  %s705_s23, 4096, %s1083_s2, [#allocation4], %s871_s25, %s871_s25, %s872_s26  }
 0x18a   :  { %866 = dma.done.wait [#allocation4], 4096  }
 0x18b   :  { %867 = vsyncadd [#allocation4], 4294963200 }
 0x18c   :  { %714 = vsyncpa [#allocation4], 1 }

</bundles_post_ra>
